<compile_context>
chip_gen: v7x
topology: tpu7x:2x2x1
jax: 0.10.0
libtpu: 0.0.40
codegen_flags: <defaults>
</compile_context>

<pallas_src>
import jax
import jax.numpy as jnp
from jax.experimental import pallas as pl
from jax.experimental.pallas import tpu as pltpu


def _round_up(x, m):
    return (x + m - 1) // m * m


def _dft_cos_sin(h, w, dtype=jnp.bfloat16):
    """Real / imag parts of the Kronecker 2-D DFT operator, each (H*W, H*W).

    D[(j*W+k), (u*W+v)] = exp(-2*pi*i*(u*j/H + v*k/W))
    """
    ju = (jnp.outer(jnp.arange(h, dtype=jnp.float32),
                    jnp.arange(h, dtype=jnp.float32)) / float(h))     # (h, h)
    kv = (jnp.outer(jnp.arange(w, dtype=jnp.float32),
                    jnp.arange(w, dtype=jnp.float32)) / float(w))     # (w, w)
    ang = -2.0 * jnp.pi * (ju[:, None, :, None] + kv[None, :, None, :])
    ang = ang.reshape(h * w, h * w)
    return jnp.cos(ang).astype(dtype), jnp.sin(ang).astype(dtype)


def _make_kernel(bm, tiny):
    def kernel(x_ref, cos_ref, sin_ref, out_ref):
        # x_ref: (2*bm, hw) bf16 -- rows [0, bm) = gt images, [bm, 2*bm) = rec.
        x = x_ref[...]
        # Two MXU matmuls give Re / Im of this frequency tile for gt AND rec.
        f_re = jnp.dot(x, cos_ref[...], preferred_element_type=jnp.float32)
        f_im = jnp.dot(x, sin_ref[...], preferred_element_type=jnp.float32)
        # log|F| = 0.5*log(re^2 + im^2); the clamp keeps zero bins and
        # zero-padded rows finite (padded gt/rec rows then cancel in d).
        mag2 = jnp.maximum(f_re * f_re + f_im * f_im, tiny)
        lm = 0.5 * jnp.log(mag2)
        d = lm[:bm, :] - lm[bm:, :]
        # Lane-dense partial sum; final mean happens outside the kernel so
        # the grid stays fully parallel (no resident accumulator).
        out_ref[...] = jnp.sum(d * d, axis=0)[None, None, :]
    return kernel


def fft_loss(gt, rec, size=None, sigma1=None, sigma2=None, fit_loss_weight=1):
    """Pallas TPU forward of fftLoss.  gt, rec: (N, C, H, W). Returns scalar."""
    assert gt.shape == rec.shape and gt.ndim == 4
    n, c, h, w = gt.shape
    nc = n * c
    hw = h * w

    # TODO(synk): for very large H*W the O((HW)^2) Kronecker operator should
    # be replaced by a separable (row-DFT then column-DFT) two-matmul path.

    # gt-images (paired with bm rec-images) per grid step: multiple of 8,
    # x block kept at roughly <= 2 MiB of VMEM.
    bm_cap = max(8, ((1 << 21) // (4 * hw)) // 8 * 8)
    bm = min(128, _round_up(nc, 8), bm_cap)
    nb = pl.cdiv(nc, bm)
    pad = nb * bm - nc

    # Frequency-tile width: keep the full cos/sin operators resident when they
    # are small, otherwise stream them in 512-column tiles (extra parallelism
    # + bounded VMEM for larger spatial sizes).
    if hw % 512 == 0 and 8 * hw * hw > (16 << 20):
        tf = 512
    else:
        tf = hw
    nf = hw // tf

    # Cast to bf16 BEFORE padding / concatenation (halves wrapper HBM traffic).
    gt_f = gt.reshape(nc, hw).astype(jnp.bfloat16)
    rec_f = rec.reshape(nc, hw).astype(jnp.bfloat16)
    if pad:
        gt_f = jnp.pad(gt_f, ((0, pad), (0, 0)))
        rec_f = jnp.pad(rec_f, ((0, pad), (0, 0)))
    # Block b rows: [gt images of block b ; rec images of block b].
    x = jnp.concatenate([gt_f.reshape(nb, bm, hw),
                         rec_f.reshape(nb, bm, hw)], axis=1)
    x = x.reshape(nb * 2 * bm, hw)

    dft_cos, dft_sin = _dft_cos_sin(h, w)              # (hw, hw) bf16 each

    # Explicit VMEM budget: double-buffered x block + cos/sin tiles + output
    # partials, with headroom for f32 intermediates; capped at 64 MiB (v7x).
    need = (2 * (2 * bm) * hw * 2            # x (bf16, double buffered)
            + 2 * 2 * hw * tf * 2            # cos + sin tiles (bf16, 2x buf)
            + 2 * tf * 4)                    # out partial row
    vmem_limit = int(min(64 * 1024 * 1024, max(4 * need, 16 * 1024 * 1024)))

    partials = pl.pallas_call(
        _make_kernel(bm, 1e-30),
        out_shape=jax.ShapeDtypeStruct((nb, 1, hw), jnp.float32),
        grid_spec=pltpu.PrefetchScalarGridSpec(
            num_scalar_prefetch=0,
            grid=(nb, nf),
            in_specs=[pl.BlockSpec((2 * bm, hw), lambda b, f: (b, 0)),
                      pl.BlockSpec((hw, tf), lambda b, f: (0, f)),
                      pl.BlockSpec((hw, tf), lambda b, f: (0, f))],
            out_specs=pl.BlockSpec((1, 1, tf), lambda b, f: (b, 0, f)),
        ),
        compiler_params=pltpu.CompilerParams(
            dimension_semantics=("parallel", "parallel"),
            vmem_limit_bytes=vmem_limit),
    )(x, dft_cos, dft_sin)

    loss = jnp.sum(partials) * (1.0 / float(nc * hw))
    return loss * fit_loss_weight


def _reference(gt, rec):
    """Pure-JAX reference of the PyTorch forward (fftshift is MSE-invariant)."""
    fg = jnp.log(jnp.abs(jnp.fft.fft2(gt)))
    fr = jnp.log(jnp.abs(jnp.fft.fft2(rec)))
    return jnp.mean((fg - fr) ** 2)


if __name__ == "__main__":
    key = jax.random.PRNGKey(0)
    k1, k2 = jax.random.split(key)
    N, C, H, W = 2, 4, 16, 16
    gt = jax.random.uniform(k1, (N, C, H, W), dtype=jnp.float32) + 0.1
    rec = jax.random.uniform(k2, (N, C, H, W), dtype=jnp.float32) + 0.1

    loss = jax.block_until_ready(fft_loss(gt, rec))
    ref = jax.block_until_ready(_reference(gt, rec))
    assert jnp.isfinite(loss), "loss is not finite"
    assert jnp.allclose(loss, ref, rtol=2e-2, atol=2e-2), (loss, ref)

    print("KERNEL_OK")
</pallas_src>

<mosaic_0001>
module attributes {stable_mosaic.version = 11 : i64} {
  func.func @kernel(%arg0: i32, %arg1: i32, %arg2: memref<16x256xbf16, #tpu.memory_space<vmem>>, %arg3: memref<256x256xbf16, #tpu.memory_space<vmem>>, %arg4: memref<256x256xbf16, #tpu.memory_space<vmem>>, %arg5: memref<1x1x256xf32, #tpu.memory_space<vmem>>) attributes {dimension_semantics = [#tpu.dimension_semantics<parallel>, #tpu.dimension_semantics<parallel>], iteration_bounds = array<i64: 1, 1>, scalar_prefetch = 0 : i64, scratch_operands = 0 : i64, tpu.core_type = #tpu.core_type<tc>, window_params = [{transform_indices = @transform_0, window_bounds = array<i64: 16, 256>}, {transform_indices = @transform_1, window_bounds = array<i64: 256, 256>}, {transform_indices = @transform_2, window_bounds = array<i64: 256, 256>}, {transform_indices = @transform_3, window_bounds = array<i64: 1, 1, 256>}]} {
    %c0 = arith.constant 0 : index
    %c0_0 = arith.constant 0 : index
    %0 = vector.load %arg2[%c0, %c0_0] : memref<16x256xbf16, #tpu.memory_space<vmem>>, vector<16x256xbf16>
    %c0_1 = arith.constant 0 : index
    %c0_2 = arith.constant 0 : index
    %1 = vector.load %arg3[%c0_1, %c0_2] : memref<256x256xbf16, #tpu.memory_space<vmem>>, vector<256x256xbf16>
    %cst = arith.constant dense<0.000000e+00> : vector<16x256xf32>
    %2 = tpu.matmul %0, %1, %cst {dimension_numbers = #tpu.dot_dimension_numbers<[1], [0], [0], [1], [0, 0, 1, 1], [], []>} : vector<16x256xbf16>, vector<256x256xbf16>, vector<16x256xf32> -> vector<16x256xf32>
    %c0_3 = arith.constant 0 : index
    %c0_4 = arith.constant 0 : index
    %3 = vector.load %arg4[%c0_3, %c0_4] : memref<256x256xbf16, #tpu.memory_space<vmem>>, vector<256x256xbf16>
    %cst_5 = arith.constant dense<0.000000e+00> : vector<16x256xf32>
    %4 = tpu.matmul %0, %3, %cst_5 {dimension_numbers = #tpu.dot_dimension_numbers<[1], [0], [0], [1], [0, 0, 1, 1], [], []>} : vector<16x256xbf16>, vector<256x256xbf16>, vector<16x256xf32> -> vector<16x256xf32>
    %5 = arith.mulf %2, %2 : vector<16x256xf32>
    %6 = arith.mulf %4, %4 : vector<16x256xf32>
    %7 = arith.addf %5, %6 : vector<16x256xf32>
    %cst_6 = arith.constant 1.000000e-30 : f32
    %8 = vector.broadcast %cst_6 : f32 to vector<16x256xf32>
    %9 = arith.maximumf %7, %8 : vector<16x256xf32>
    %10 = math.log %9 : vector<16x256xf32>
    %cst_7 = arith.constant 5.000000e-01 : f32
    %11 = vector.broadcast %cst_7 : f32 to vector<16x256xf32>
    %12 = arith.mulf %11, %10 : vector<16x256xf32>
    %13 = vector.extract_strided_slice %12 {offsets = [0, 0], sizes = [8, 256], strides = [1, 1]} : vector<16x256xf32> to vector<8x256xf32>
    %14 = vector.extract_strided_slice %12 {offsets = [8, 0], sizes = [8, 256], strides = [1, 1]} : vector<16x256xf32> to vector<8x256xf32>
    %15 = arith.subf %13, %14 : vector<8x256xf32>
    %16 = arith.mulf %15, %15 : vector<8x256xf32>
    %cst_8 = arith.constant dense<0.000000e+00> : vector<256xf32>
    %17 = vector.multi_reduction <add>, %16, %cst_8 [0] : vector<8x256xf32> to vector<256xf32>
    %18 = vector.shape_cast %17 : vector<256xf32> to vector<1x1x256xf32>
    %c0_9 = arith.constant 0 : index
    %c0_10 = arith.constant 0 : index
    %c0_11 = arith.constant 0 : index
    %19 = vector.load %arg5[%c0_9, %c0_10, %c0_11] : memref<1x1x256xf32, #tpu.memory_space<vmem>>, vector<1x1x256xf32>
    tpu.vector_store %arg5[%c0_9, %c0_10, %c0_11], %18 {strides = array<i32>} : memref<1x1x256xf32, #tpu.memory_space<vmem>>, vector<1x1x256xf32>,
    return
  }
  func.func @transform_0(%arg0: i32, %arg1: i32) -> (i32, i32) {
    %c0_i32 = arith.constant 0 : i32
    %c0_i32_0 = arith.constant 0 : i32
    return %arg0, %c0_i32 : i32, i32
  }
  func.func @transform_1(%arg0: i32, %arg1: i32) -> (i32, i32) {
    %c0_i32 = arith.constant 0 : i32
    %c0_i32_0 = arith.constant 0 : i32
    return %c0_i32, %arg1 : i32, i32
  }
  func.func @transform_2(%arg0: i32, %arg1: i32) -> (i32, i32) {
    %c0_i32 = arith.constant 0 : i32
    %c0_i32_0 = arith.constant 0 : i32
    return %c0_i32, %arg1 : i32, i32
  }
  func.func @transform_3(%arg0: i32, %arg1: i32) -> (i32, i32, i32) {
    %c0_i32 = arith.constant 0 : i32
    %c0_i32_0 = arith.constant 0 : i32
    return %arg0, %c0_i32, %arg1 : i32, i32, i32
  }
}

</mosaic_0001>

<bundles_post_ra>
// kernel: tpu_custom_call.1
= control target key start
LH: loop header
LB: loop body
LE: loop exit
PB: predicated region body
PF: predicated region fallthrough
CT: control target
= control target key end

     0   :  { %8 = vsyncpa [#allocation3], 0  ;;  %s986_s0 = inlined_call_operand.hbm [shape: bf16[16,256], index: 0, kind: input, shape index: {}]   ;;  %s987_s1 = inlined_call_operand.hbm [shape: bf16[256,256], index: 1, kind: input, shape index: {}]   ;;  %s988_s2 = inlined_call_operand.hbm [shape: bf16[256,256], index: 2, kind: input, shape index: {}]   ;;  %s989_s3 = inlined_call_operand.hbm [shape: f32[1,1,256], index: 3, kind: output, shape index: {}]  }
   0x1   :  { %9 = vsyncpa [#allocation6], 0 }
   0x2   :  { %10 = vsyncpa [#allocation4], 0  ;;  %s895_s12 = smov [#allocation5]   ;;  %s896_s14 = smov [#allocation2]  }
   0x3   :  { %s28_s13 = sshll.u32 %s895_s12, 4  ;;  %s16_s15 = sshll.u32 %s896_s14, 4  ;;  %s29_s13 = int_to_ptr.vmem [resolvable:$true] %s28_s13  ;;  %s922_s15 = int_to_ptr.vmem [resolvable:$true] %s16_s15 }
   0x4   :  { %s801_s18 = scalar_lea.hbm %s987_s1, 4096 }
   0x5   :  { %p802_p0 = scmp.ne.s32.totalorder %s987_s1, %s801_s18  ;;  %p805_p1 = scmp.lt.u32.totalorder %s801_s18, %s987_s1 }
   0x7   :  { %p807_p2 = pnand %p805_p1, %p802_p0 }
   0x9   :  { %810 = shalt.err (!%p807_p2)
}
   0xa   :  { %s811_s23 = scalar_lea.vmem %s29_s13, 4096  ;;  %p816_p4 = scmp.lt.s32.totalorder %s29_s13, %s29_s13 }
   0xb   :  { %p812_p3 = scmp.ne.s32.totalorder %s29_s13, %s811_s23  ;;  %p817_p5 = scmp.lt.s32.totalorder %s811_s23, %s811_s23 }
   0xd   :  { %p818_p6 = por %p817_p5, %p816_p4 }
   0xf   :  { %p819_p7 = pnand %p818_p6, %p812_p3 }
  0x11   :  { %822 = shalt.err (!%p819_p7)
}
  0x12   :  { %s897_s24 = smov 128   ;;  %s898_s25 = smov 8  }
  0x13   :  { %34 = dma.hbm_to_vmem [thread:$0]  %s987_s1, 4096, %s29_s13, [#allocation6], %s897_s24, %s897_s24, %s898_s25  }
  0x14   :  { %s823_s30 = scalar_lea.hbm %s986_s0, 256 }
  0x15   :  { %p824_p8 = scmp.ne.s32.totalorder %s986_s0, %s823_s30  ;;  %p827_p9 = scmp.lt.u32.totalorder %s823_s30, %s986_s0 }
  0x17   :  { %p829_p10 = pnand %p827_p9, %p824_p8 }
  0x19   :  { %832 = shalt.err (!%p829_p10)
}
  0x1a   :  { %s833_s8 = scalar_lea.vmem %s922_s15, 256  ;;  %p838_p12 = scmp.lt.s32.totalorder %s922_s15, %s922_s15 }
  0x1b   :  { %p834_p11 = scmp.ne.s32.totalorder %s922_s15, %s833_s8  ;;  %p839_p13 = scmp.lt.s32.totalorder %s833_s8, %s833_s8 }
  0x1d   :  { %p840_p0 = por %p839_p13, %p838_p12 }
  0x1f   :  { %p841_p1 = pnand %p840_p0, %p834_p11 }
  0x21   :  { %844 = shalt.err (!%p841_p1)
}
  0x22   :  { %22 = dma.hbm_to_vmem [thread:$0]  %s986_s0, 256, %s922_s15, [#allocation3], %s897_s24, %s897_s24, %s898_s25  }
  0x23   :  { %s899_s10 = smov [#allocation7]   ;;  %s845_s14 = scalar_lea.hbm %s988_s2, 4096 }
  0x24   :  { %s40_s11 = sshll.u32 %s899_s10, 4  ;;  %p846_p2 = scmp.ne.s32.totalorder %s988_s2, %s845_s14  ;;  %s41_s11 = int_to_ptr.vmem [resolvable:$true] %s40_s11 }
  0x25   :  { %p849_p3 = scmp.lt.u32.totalorder %s845_s14, %s988_s2 }
  0x27   :  { %p851_p4 = pnand %p849_p3, %p846_p2 }
  0x29   :  { %854 = shalt.err (!%p851_p4)
}
  0x2a   :  { %s855_s20 = scalar_lea.vmem %s41_s11, 4096  ;;  %p860_p6 = scmp.lt.s32.totalorder %s41_s11, %s41_s11 }
  0x2b   :  { %p856_p5 = scmp.ne.s32.totalorder %s41_s11, %s855_s20  ;;  %p861_p7 = scmp.lt.s32.totalorder %s855_s20, %s855_s20 }
  0x2d   :  { %p862_p8 = por %p861_p7, %p860_p6 }
  0x2f   :  { %p863_p9 = pnand %p862_p8, %p856_p5 }
  0x31   :  { %866 = shalt.err (!%p863_p9)
}
  0x32   :  { %46 = dma.hbm_to_vmem [thread:$0]  %s988_s2, 4096, %s41_s11, [#allocation6], %s897_s24, %s897_s24, %s898_s25  }
  0x33   :  { %889 = dma.done.wait [#allocation3], 256  }
  0x34   :  { %890 = vsyncadd [#allocation3], 4294967040 }
  0x35   :  { %891 = dma.done.wait [#allocation6], 8192  }
  0x36   :  { %892 = vsyncadd [#allocation6], 4294959104  ;;  %v694_v0 = vld [vmem:[#allocation5 + $0x4] ss:$8 sps:$4 sm:$0xff]   ;;  %v698_v2 = vld [vmem:[#allocation5] ss:$8 sps:$4 sm:$0xff]  }
  0x37   :  { %v696_v1 = vld [vmem:[#allocation7 + $0x4] ss:$8 sps:$4 sm:$0xff]   ;;  %260 = vmatprep.subr.bf16.mxu0 %v694_v0  ;;  %v699_v3 = vld [vmem:[#allocation7] ss:$8 sps:$4 sm:$0xff]   ;;  %v700_v4 = vld [vmem:[#allocation5 + $0x14] ss:$8 sps:$4 sm:$0xff]  }
  0x38   :  { %495 = vmatprep.subr.bf16.mxu1 %v696_v1  ;;  %261 = vmatpush1.bf16.msra.mxu0 %v698_v2  ;;  %v702_v5 = vld [vmem:[#allocation7 + $0x14] ss:$8 sps:$4 sm:$0xff]   ;;  %v704_v6 = vld [vmem:[#allocation5 + $0x10] ss:$8 sps:$4 sm:$0xff]   ;;  %v706_v8 = vld [vmem:[#allocation5 + $0x24] ss:$8 sps:$4 sm:$0xff]  }
  0x39   :  { %496 = vmatpush1.bf16.msra.mxu1 %v699_v3  ;;  %262 = vmatprep.subr.bf16.mxu0 %v700_v4  ;;  %v705_v7 = vld [vmem:[#allocation7 + $0x10] ss:$8 sps:$4 sm:$0xff]   ;;  %v708_v9 = vld [vmem:[#allocation7 + $0x24] ss:$8 sps:$4 sm:$0xff]   ;;  %v710_v10 = vld [vmem:[#allocation5 + $0x20] ss:$8 sps:$4 sm:$0xff]  }
  0x3a   :  { %497 = vmatprep.subr.bf16.mxu1 %v702_v5  ;;  %v711_v11 = vld [vmem:[#allocation7 + $0x20] ss:$8 sps:$4 sm:$0xff]   ;;  %v712_v12 = vld [vmem:[#allocation5 + $0x34] ss:$8 sps:$4 sm:$0xff]   ;;  %v716_v14 = vld [vmem:[#allocation5 + $0x30] ss:$8 sps:$4 sm:$0xff]  }
  0x3b   :  { %v714_v13 = vld [vmem:[#allocation7 + $0x34] ss:$8 sps:$4 sm:$0xff]   ;;  %v717_v15 = vld [vmem:[#allocation7 + $0x30] ss:$8 sps:$4 sm:$0xff]   ;;  %v718_v16 = vld [vmem:[#allocation5 + $0x44] ss:$8 sps:$4 sm:$0xff]  }
  0x3c   :  { %263 = vmatpush1.bf16.msra.mxu0 %v704_v6  ;;  %v720_v17 = vld [vmem:[#allocation7 + $0x44] ss:$8 sps:$4 sm:$0xff]   ;;  %v722_v18 = vld [vmem:[#allocation5 + $0x40] ss:$8 sps:$4 sm:$0xff]   ;;  %v724_v20 = vld [vmem:[#allocation5 + $0x54] ss:$8 sps:$4 sm:$0xff]  }
  0x3d   :  { %498 = vmatpush1.bf16.msra.mxu1 %v705_v7  ;;  %264 = vmatprep.subr.bf16.mxu0 %v706_v8  ;;  %v723_v19 = vld [vmem:[#allocation7 + $0x40] ss:$8 sps:$4 sm:$0xff]   ;;  %v726_v21 = vld [vmem:[#allocation7 + $0x54] ss:$8 sps:$4 sm:$0xff]   ;;  %v728_v22 = vld [vmem:[#allocation5 + $0x50] ss:$8 sps:$4 sm:$0xff]  }
  0x3e   :  { %499 = vmatprep.subr.bf16.mxu1 %v708_v9  ;;  %v729_v23 = vld [vmem:[#allocation7 + $0x50] ss:$8 sps:$4 sm:$0xff]   ;;  %v730_v24 = vld [vmem:[#allocation5 + $0x64] ss:$8 sps:$4 sm:$0xff]   ;;  %v734_v26 = vld [vmem:[#allocation5 + $0x60] ss:$8 sps:$4 sm:$0xff]  }
  0x3f   :  { %v732_v25 = vld [vmem:[#allocation7 + $0x64] ss:$8 sps:$4 sm:$0xff]   ;;  %v735_v27 = vld [vmem:[#allocation7 + $0x60] ss:$8 sps:$4 sm:$0xff]   ;;  %v736_v28 = vld [vmem:[#allocation5 + $0x74] ss:$8 sps:$4 sm:$0xff]  }
  0x40   :  { %265 = vmatpush1.bf16.msra.mxu0 %v710_v10  ;;  %v738_v29 = vld [vmem:[#allocation7 + $0x74] ss:$8 sps:$4 sm:$0xff]   ;;  %v740_v30 = vld [vmem:[#allocation5 + $0x70] ss:$8 sps:$4 sm:$0xff]   ;;  %v742_v32 = vld [vmem:[#allocation5 + $0x84] ss:$8 sps:$4 sm:$0xff]  }
  0x41   :  { %500 = vmatpush1.bf16.msra.mxu1 %v711_v11  ;;  %266 = vmatprep.subr.bf16.mxu0 %v712_v12  ;;  %v741_v31 = vld [vmem:[#allocation7 + $0x70] ss:$8 sps:$4 sm:$0xff]   ;;  %v744_v33 = vld [vmem:[#allocation7 + $0x84] ss:$8 sps:$4 sm:$0xff]   ;;  %v746_v34 = vld [vmem:[#allocation5 + $0x80] ss:$8 sps:$4 sm:$0xff]  }
  0x42   :  { %501 = vmatprep.subr.bf16.mxu1 %v714_v13  ;;  %v747_v35 = vld [vmem:[#allocation7 + $0x80] ss:$8 sps:$4 sm:$0xff]   ;;  %v748_v36 = vld [vmem:[#allocation5 + $0x94] ss:$8 sps:$4 sm:$0xff]   ;;  %v752_v38 = vld [vmem:[#allocation5 + $0x90] ss:$8 sps:$4 sm:$0xff]  }
  0x43   :  { %v750_v37 = vld [vmem:[#allocation7 + $0x94] ss:$8 sps:$4 sm:$0xff]   ;;  %v753_v39 = vld [vmem:[#allocation7 + $0x90] ss:$8 sps:$4 sm:$0xff]   ;;  %v754_v40 = vld [vmem:[#allocation5 + $0xa4] ss:$8 sps:$4 sm:$0xff]  }
  0x44   :  { %267 = vmatpush1.bf16.msra.mxu0 %v716_v14  ;;  %v756_v41 = vld [vmem:[#allocation7 + $0xa4] ss:$8 sps:$4 sm:$0xff]   ;;  %v758_v42 = vld [vmem:[#allocation5 + $0xa0] ss:$8 sps:$4 sm:$0xff]   ;;  %v760_v44 = vld [vmem:[#allocation5 + $0xb4] ss:$8 sps:$4 sm:$0xff]  }
  0x45   :  { %502 = vmatpush1.bf16.msra.mxu1 %v717_v15  ;;  %268 = vmatprep.subr.bf16.mxu0 %v718_v16  ;;  %v759_v43 = vld [vmem:[#allocation7 + $0xa0] ss:$8 sps:$4 sm:$0xff]   ;;  %v762_v45 = vld [vmem:[#allocation7 + $0xb4] ss:$8 sps:$4 sm:$0xff]   ;;  %v764_v47 = vld [vmem:[#allocation5 + $0xb0] ss:$8 sps:$4 sm:$0xff]  }
  0x46   :  { %503 = vmatprep.subr.bf16.mxu1 %v720_v17  ;;  %v792_v46 = vld [vmem:[#allocation2 + $0x4] ss:$8 sps:$4 sm:$0xff]   ;;  %v765_v48 = vld [vmem:[#allocation7 + $0xb0] ss:$8 sps:$4 sm:$0xff]   ;;  %v766_v49 = vld [vmem:[#allocation5 + $0xc4] ss:$8 sps:$4 sm:$0xff]  }
  0x47   :  { %v768_v50 = vld [vmem:[#allocation7 + $0xc4] ss:$8 sps:$4 sm:$0xff]   ;;  %292 = vmatprep.mubr.bf16.mxu0 %v792_v46  ;;  %527 = vmatprep.mubr.bf16.mxu1 %v792_v46  ;;  %v770_v51 = vld [vmem:[#allocation5 + $0xc0] ss:$8 sps:$4 sm:$0xff]   ;;  %v772_v53 = vld [vmem:[#allocation5 + $0xd4] ss:$8 sps:$4 sm:$0xff]  }
  0x48   :  { %269 = vmatpush1.bf16.msra.mxu0 %v722_v18  ;;  %v771_v52 = vld [vmem:[#allocation7 + $0xc0] ss:$8 sps:$4 sm:$0xff]   ;;  %v774_v54 = vld [vmem:[#allocation7 + $0xd4] ss:$8 sps:$4 sm:$0xff]   ;;  %v776_v55 = vld [vmem:[#allocation5 + $0xd0] ss:$8 sps:$4 sm:$0xff]  }
  0x49   :  { %504 = vmatpush1.bf16.msra.mxu1 %v723_v19  ;;  %270 = vmatprep.subr.bf16.mxu0 %v724_v20  ;;  %v777_v56 = vld [vmem:[#allocation7 + $0xd0] ss:$8 sps:$4 sm:$0xff]   ;;  %v778_v57 = vld [vmem:[#allocation5 + $0xe4] ss:$8 sps:$4 sm:$0xff]   ;;  %v782_v59 = vld [vmem:[#allocation5 + $0xe0] ss:$8 sps:$4 sm:$0xff]  }
  0x4a   :  { %505 = vmatprep.subr.bf16.mxu1 %v726_v21  ;;  %v780_v58 = vld [vmem:[#allocation7 + $0xe4] ss:$8 sps:$4 sm:$0xff]   ;;  %v783_v60 = vld [vmem:[#allocation7 + $0xe0] ss:$8 sps:$4 sm:$0xff]   ;;  %v784_v61 = vld [vmem:[#allocation5 + $0xf4] ss:$8 sps:$4 sm:$0xff]  }
  0x4b   :  { %v786_v62 = vld [vmem:[#allocation7 + $0xf4] ss:$8 sps:$4 sm:$0xff]   ;;  %v788_v63 = vld [vmem:[#allocation5 + $0xf0] ss:$8 sps:$4 sm:$0xff]   ;;  %v900_v46 = vmov 1966171168  }
  0x4c   :  { %271 = vmatpush1.bf16.msra.mxu0 %v728_v22  ;;  %v789_v0 = vld [vmem:[#allocation7 + $0xf0] ss:$8 sps:$4 sm:$0xff]   ;;  %s901_s2 = smov [#allocation8]  }
  0x4d   :  { %506 = vmatpush1.bf16.msra.mxu1 %v729_v23  ;;  %272 = vmatprep.subr.bf16.mxu0 %v730_v24  ;;  %v790_v1 = vld [vmem:[#allocation2] ss:$8 sps:$4 sm:$0xff]   ;;  %s611_s21 = sshll.u32 %s901_s2, 4  ;;  %s612_s21 = int_to_ptr.vmem [resolvable:$true] %s611_s21 }
  0x4e   :  { %507 = vmatprep.subr.bf16.mxu1 %v732_v25  ;;  %s867_s22 = scalar_lea.vmem %s612_s21, 32  ;;  %p872_p11 = scmp.lt.s32.totalorder %s612_s21, %s612_s21 }
  0x4f   :  { %p868_p10 = scmp.ne.s32.totalorder %s612_s21, %s867_s22  ;;  %p873_p12 = scmp.lt.s32.totalorder %s867_s22, %s867_s22 }
  0x50   :  { %273 = vmatpush1.bf16.msra.mxu0 %v734_v26 }
  0x51   :  { %508 = vmatpush1.bf16.msra.mxu1 %v735_v27  ;;  %274 = vmatprep.subr.bf16.mxu0 %v736_v28  ;;  %p874_p13 = por %p873_p12, %p872_p11 }
  0x52   :  { %509 = vmatprep.subr.bf16.mxu1 %v738_v29 }
  0x53   :  { %p875_p0 = pnand %p874_p13, %p868_p10 }
  0x54   :  { %275 = vmatpush1.bf16.msra.mxu0 %v740_v30 }
  0x55   :  { %510 = vmatpush1.bf16.msra.mxu1 %v741_v31  ;;  %276 = vmatprep.subr.bf16.mxu0 %v742_v32 }
  0x56   :  { %511 = vmatprep.subr.bf16.mxu1 %v744_v33 }
  0x58   :  { %277 = vmatpush1.bf16.msra.mxu0 %v746_v34 }
  0x59   :  { %512 = vmatpush1.bf16.msra.mxu1 %v747_v35  ;;  %278 = vmatprep.subr.bf16.mxu0 %v748_v36 }
  0x5a   :  { %513 = vmatprep.subr.bf16.mxu1 %v750_v37 }
  0x5c   :  { %279 = vmatpush1.bf16.msra.mxu0 %v752_v38 }
  0x5d   :  { %514 = vmatpush1.bf16.msra.mxu1 %v753_v39  ;;  %280 = vmatprep.subr.bf16.mxu0 %v754_v40 }
  0x5e   :  { %515 = vmatprep.subr.bf16.mxu1 %v756_v41 }
  0x60   :  { %281 = vmatpush1.bf16.msra.mxu0 %v758_v42 }
  0x61   :  { %516 = vmatpush1.bf16.msra.mxu1 %v759_v43  ;;  %282 = vmatprep.subr.bf16.mxu0 %v760_v44 }
  0x62   :  { %517 = vmatprep.subr.bf16.mxu1 %v762_v45 }
  0x64   :  { %283 = vmatpush1.bf16.msra.mxu0 %v764_v47  ;;  %v586_v47 = vunpack.c.l.s4 %v900_v46 }
  0x65   :  { %518 = vmatpush1.bf16.msra.mxu1 %v765_v48  ;;  %284 = vmatprep.subr.bf16.mxu0 %v766_v49  ;;  %v588_v48 = vlaneseq }
  0x66   :  { %519 = vmatprep.subr.bf16.mxu1 %v768_v50 }
  0x67   :  { %vm602_vm0 = vcmp.lt.s32.totalorder %v588_v48, 256 }
  0x68   :  { %285 = vmatpush1.bf16.msra.mxu0 %v770_v51 }
  0x69   :  { %520 = vmatpush1.bf16.msra.mxu1 %v771_v52  ;;  %286 = vmatprep.subr.bf16.mxu0 %v772_v53  ;;  %v587_v53 = vunpack.c.0.s8 %v586_v47 }
  0x6a   :  { %521 = vmatprep.subr.bf16.mxu1 %v774_v54  ;;  %v589_v54 = vshrl.u32 %v588_v48, 7 }
  0x6c   :  { %287 = vmatpush1.bf16.msra.mxu0 %v776_v55 }
  0x6d   :  { %522 = vmatpush1.bf16.msra.mxu1 %v777_v56  ;;  %288 = vmatprep.subr.bf16.mxu0 %v778_v57 }
  0x6e   :  { %523 = vmatprep.subr.bf16.mxu1 %v780_v58 }
  0x70   :  { %289 = vmatpush1.bf16.msra.mxu0 %v782_v59  ;;  %v590_v59 = vsub.s32 %v587_v53, %v589_v54 }
  0x71   :  { %524 = vmatpush1.bf16.msra.mxu1 %v783_v60  ;;  %290 = vmatprep.subr.bf16.mxu0 %v784_v61 }
  0x72   :  { %525 = vmatprep.subr.bf16.mxu1 %v786_v62 }
  0x74   :  { %291 = vmatpush1.bf16.msra.mxu0 %v788_v63 }
  0x75   :  { %526 = vmatpush1.bf16.msra.mxu1 %v789_v0 }
  0x77   :  { %293 = vmatmul.mubr.bf16.vlgmr.msra.gmra.mrb[0].mxu0 %v790_v1 }
  0x78   :  { %528 = vmatmul.mubr.bf16.vlgmr.msra.gmra.mrb[0].mxu1 %v790_v1 }
 0x14a   :  { %v294_v2 = vpop.f32.mrb[0].mxu0 }
 0x14b   :  { %v529_v3 = vpop.f32.mrb[0].mxu1  ;;  %v538_v4 = vmul.f32 %v294_v2, %v294_v2  ;;  %v296_v6 = vpop.f32.mrb[1].mxu0 }
 0x14c   :  { %v542_v5 = vmul.f32 %v529_v3, %v529_v3  ;;  %v531_v7 = vpop.f32.mrb[1].mxu1  ;;  %v539_v8 = vmul.f32 %v296_v6, %v296_v6  ;;  %v298_v10 = vpop.f32.mrb[2].mxu0 }
 0x14d   :  { %v543_v9 = vmul.f32 %v531_v7, %v531_v7  ;;  %v533_v11 = vpop.f32.mrb[2].mxu1  ;;  %v540_v13 = vmul.f32 %v298_v10, %v298_v10  ;;  %v300_v15 = vpop.f32.mrb[3].mxu0 }
 0x14e   :  { %v546_v12 = vadd.f32 %v542_v5, %v538_v4  ;;  %v544_v14 = vmul.f32 %v533_v11, %v533_v11  ;;  %v535_v16 = vpop.f32.mrb[3].mxu1  ;;  %v541_v18 = vmul.f32 %v300_v15, %v300_v15 }
 0x14f   :  { %v547_v17 = vadd.f32 %v543_v9, %v539_v8  ;;  %v545_v19 = vmul.f32 %v535_v16, %v535_v16 }
 0x150   :  { %v550_v20 = vmax.f32 %v546_v12, 1e-30  ;;  %v548_v21 = vadd.f32 %v544_v14, %v540_v13 }
 0x151   :  { %v551_v22 = vmax.f32 %v547_v17, 1e-30  ;;  %v549_v23 = vadd.f32 %v545_v19, %v541_v18 }
 0x152   :  { %793 = vlog2.f32 %v550_v20  ;;  %v552_v24 = vmax.f32 %v548_v21, 1e-30 }
 0x153   :  { %795 = vlog2.f32 %v551_v22  ;;  %v553_v25 = vmax.f32 %v549_v23, 1e-30 }
 0x154   :  { %797 = vlog2.f32 %v552_v24 }
 0x155   :  { %799 = vlog2.f32 %v553_v25 }
 0x15c   :  { %v794_v26 = vpop.eup %793 }
 0x15d   :  { %v796_v27 = vpop.eup %795  ;;  %v555_v28 = vmul.f32 0.6931472, %v794_v26 }
 0x15e   :  { %v798_v29 = vpop.eup %797  ;;  %v557_v30 = vmul.f32 0.6931472, %v796_v27 }
 0x15f   :  { %v800_v31 = vpop.eup %799  ;;  %v559_v32 = vmul.f32 0.6931472, %v798_v29  ;;  %v562_v34 = vmul.f32 0.5, %v555_v28 }
 0x160   :  { %v561_v33 = vmul.f32 0.6931472, %v800_v31  ;;  %v563_v36 = vmul.f32 0.5, %v557_v30 }
 0x161   :  { %v564_v35 = vmul.f32 0.5, %v559_v32 }
 0x162   :  { %v565_v37 = vmul.f32 0.5, %v561_v33 }
 0x163   :  { %v566_v38 = vsub.f32 %v562_v34, %v564_v35 }
 0x164   :  { %v567_v39 = vsub.f32 %v563_v36, %v565_v37 }
 0x165   :  { %v568_v40 = vmul.f32 %v566_v38, %v566_v38 }
 0x166   :  { %v569_v41 = vmul.f32 %v567_v39, %v567_v39 }
 0x167   :  { %v570_v42 = vrot.slane %v568_v40, 4 }
 0x168   :  { %v576_v43 = vrot.slane %v569_v41, 4 }
 0x169   :  { %v571_v44 = vadd.f32 %v570_v42, %v568_v40 }
 0x16a   :  { %v577_v45 = vadd.f32 %v576_v43, %v569_v41 }
 0x16b   :  { %v572_v49 = vrot.slane %v571_v44, 2 }
 0x16c   :  { %v578_v50 = vrot.slane %v577_v45, 2 }
 0x16d   :  { %v573_v51 = vadd.f32 %v572_v49, %v571_v44 }
 0x16e   :  { %v579_v52 = vadd.f32 %v578_v50, %v577_v45 }
 0x16f   :  { %v574_v55 = vrot.slane %v573_v51, 1 }
 0x170   :  { %v580_v56 = vrot.slane %v579_v52, 1 }
 0x171   :  { %v575_v57 = vadd.f32 %v574_v55, %v573_v51 }
 0x172   :  { %v581_v58 = vadd.f32 %v580_v56, %v579_v52 }
 0x174   :  { %v584_v60 = vcombine.low %v575_v57, %v581_v58 }
 0x176   :  { %v591_v61 = vrot.slane %v584_v60, %v590_v59 }
 0x178   :  { %v598_v62 = vrot.slane %v591_v61, %v590_v59 }
 0x17a   :  { %604 = vst.msk [vmem:[#allocation8] sm:$0x3] %vm602_vm0, %v598_v62 }
 0x17b   :  { %878 = shalt.err (!%p875_p0)
}
 0x17c   :  { %s879_s25 = scalar_lea.hbm %s989_s3, 32 }
 0x17d   :  { %p880_p1 = scmp.ne.s32.totalorder %s989_s3, %s879_s25  ;;  %p883_p2 = scmp.lt.u32.totalorder %s879_s25, %s989_s3 }
 0x17f   :  { %p885_p3 = pnand %p883_p2, %p880_p1 }
 0x181   :  { %888 = shalt.err (!%p885_p3)
}
 0x182   :  { %614 = dma.vmem_to_hbm [thread:$0]  %s612_s21, 32, %s989_s3, [#allocation4]  }
 0x183   :  { %893 = dma.done.wait [#allocation4], 32  }
 0x184   :  { %894 = vsyncadd [#allocation4], 4294967264 }
 0x185   :  { %618 = vsyncpa [#allocation3], 1 }
 0x186   :  { %619 = vsyncpa [#allocation6], 1 }
 0x187   :  { %620 = vsyncpa [#allocation4], 1 }

</bundles_post_ra>
